<compile_context>
chip_gen: v6e
topology: v6e:2x2x1
jax: 0.10.0
libtpu: 0.0.40
codegen_flags: <defaults>
</compile_context>

<pallas_src>
import functools

import jax
import jax.numpy as jnp
import numpy as np
from jax.experimental import pallas as pl
from jax.experimental.pallas import tpu as pltpu


def _round_up(x, m):
    return ((x + m - 1) // m) * m


def _full_spec(a):
    zeros = (0,) * a.ndim
    return pl.BlockSpec(a.shape, lambda *_: zeros)


# ---------------------------------------------------------------------------
# shared MLP tail: ReLU(h_pre) -> hidden Linears+ReLU -> out Linear
#                  -> GroupNorm(1, C) -> residual add
# ---------------------------------------------------------------------------
def _mlp_tail(h_pre, hidden, wo, bo, g, bt, layer_norm, residual,
              compute_dtype, out_dtype, eps=1e-5):
    h = jnp.maximum(h_pre, 0.0)
    for wl, bl in hidden:
        h = jnp.dot(h.astype(compute_dtype), wl,
                    preferred_element_type=jnp.float32) + bl
        h = jnp.maximum(h, 0.0)
    y = jnp.dot(h.astype(compute_dtype), wo,
                preferred_element_type=jnp.float32) + bo
    if layer_norm:
        # GroupNorm(1, C) on [M, C] == per-row normalization over all channels
        # (biased variance) with per-channel affine params.
        mean = jnp.mean(y, axis=-1, keepdims=True)
        var = jnp.mean(jnp.square(y - mean), axis=-1, keepdims=True)
        y = (y - mean) * jax.lax.rsqrt(var + eps)
        y = y * g + bt
    return (residual + y).astype(out_dtype)


# ---------------------------------------------------------------------------
# EdgeConv: e_new = e + MLP([x_i, x_j, e])    (gather + concat fused in-kernel)
# ---------------------------------------------------------------------------
def _make_edge_kernel(n_layers, layer_norm, compute_dtype, eps=1e-5):
    nw = 4 + 2 * n_layers + 4  # w0a,w0b,w0c,b0, (wh,bh)*L, wo,bo,g,bt

    def kernel(send_ref, recv_ref, e_ref, x_ref, *refs):
        w = refs[:nw]
        out_ref = refs[nw]
        w0a, w0b, w0c, b0 = (r[...] for r in w[:4])
        hidden = [(w[4 + 2 * l][...], w[5 + 2 * l][...]) for l in range(n_layers)]
        wo, bo, g, bt = (r[...] for r in w[nw - 4:nw])

        x = x_ref[...]                      # [N, C] resident in VMEM (compute dtype)
        e = e_ref[...]                      # [tm, C] f32 (also the residual)
        tm = e.shape[0]
        n_nodes = x.shape[0]

        # Gather x[send] / x[recv] as one-hot matmuls on the MXU (vectorized,
        # no per-row scalar loop).  Garbage indices in a padded tail block only
        # corrupt rows whose writes Pallas discards.
        node_iota = jax.lax.broadcasted_iota(jnp.int32, (tm, n_nodes), 1)
        oh_j = (node_iota == send_ref[...]).astype(compute_dtype)
        oh_i = (node_iota == recv_ref[...]).astype(compute_dtype)
        x_j = jnp.dot(oh_j, x, preferred_element_type=jnp.float32)
        x_i = jnp.dot(oh_i, x, preferred_element_type=jnp.float32)

        # First Linear on [x_i | x_j | e] as a split matmul (no concat materialized).
        h = (jnp.dot(x_i.astype(compute_dtype), w0a, preferred_element_type=jnp.float32)
             + jnp.dot(x_j.astype(compute_dtype), w0b, preferred_element_type=jnp.float32)
             + jnp.dot(e.astype(compute_dtype), w0c, preferred_element_type=jnp.float32)
             + b0)
        out_ref[...] = _mlp_tail(h, hidden, wo, bo, g, bt, layer_norm, e,
                                 compute_dtype, out_ref.dtype, eps)

    return kernel


def edge_conv(x, send, recv, e, p, n_layers, layer_norm, *,
              compute_dtype=jnp.float32, row_tile=512):
    E, C = e.shape
    N = x.shape[0]
    cd = compute_dtype
    tm = min(_round_up(row_tile, 8), _round_up(E, 8))
    grid = (pl.cdiv(E, tm),)

    # TODO(synk): for graphs where N*C does not fit VMEM, replace the resident-x
    # one-hot gather with a manual DMA row-gather (scalar-prefetched indices).
    w0 = p["w0"]
    weights = [w0[:C].astype(cd), w0[C:2 * C].astype(cd), w0[2 * C:].astype(cd), p["b0"]]
    for l in range(n_layers):
        weights += [p["wh"][l].astype(cd), p["bh"][l]]
    weights += [p["wo"].astype(cd), p["bo"], p["g"], p["bt"]]

    kernel = _make_edge_kernel(n_layers, layer_norm, cd)
    in_specs = [
        pl.BlockSpec((tm, 1), lambda i: (i, 0)),   # send idx
        pl.BlockSpec((tm, 1), lambda i: (i, 0)),   # recv idx
        pl.BlockSpec((tm, C), lambda i: (i, 0)),   # e rows (residual)
        pl.BlockSpec((N, C), lambda i: (0, 0)),    # x, fully resident
    ] + [_full_spec(w) for w in weights]

    return pl.pallas_call(
        kernel,
        out_shape=jax.ShapeDtypeStruct((E, C), jnp.float32),
        grid=grid,
        in_specs=in_specs,
        out_specs=pl.BlockSpec((tm, C), lambda i: (i, 0)),
        compiler_params=pltpu.CompilerParams(dimension_semantics=("parallel",)),
    )(send.reshape(E, 1).astype(jnp.int32),
      recv.reshape(E, 1).astype(jnp.int32),
      e, x.astype(cd), *weights)


# ---------------------------------------------------------------------------
# NodeConv (scatter_sum + MLP fused):
#   msg = scatter_sum(e_new, recv)   (tiled one-hot MXU matmul into VMEM scratch)
#   x_new = x + MLP([x, msg])        (concat replaced by split first matmul)
# grid = (node_tiles [parallel], edge_tiles [arbitrary reduction])
# ---------------------------------------------------------------------------
def _make_node_kernel(n_layers, layer_norm, compute_dtype, n_edges, eps=1e-5):
    nw = 3 + 2 * n_layers + 4  # w0a,w0b,b0, (wh,bh)*L, wo,bo,g,bt

    def kernel(recv_ref, e_ref, x_ref, *refs):
        w = refs[:nw]
        out_ref = refs[nw]
        acc_ref = refs[nw + 1]

        k = pl.program_id(1)
        tn = acc_ref.shape[0]
        te = e_ref.shape[0]
        needs_edge_mask = (n_edges % te) != 0

        @pl.when(k == 0)
        def _():
            acc_ref[...] = jnp.zeros_like(acc_ref)

        # Scatter-accumulate this edge chunk onto this node tile:
        #   onehot[n, kk] = (recv[kk] == n0 + n)  ->  acc += onehot @ e_chunk
        n0 = pl.program_id(0) * tn
        node_iota = jax.lax.broadcasted_iota(jnp.int32, (tn, te), 0) + n0
        onehot = (node_iota == recv_ref[...]).astype(jnp.float32)
        e_chunk = e_ref[...]
        if needs_edge_mask:
            # Zero padded-tail edge rows so garbage never reaches the accumulator.
            edge_pos = jax.lax.broadcasted_iota(jnp.int32, (te, 1), 0) + k * te
            e_chunk = jnp.where(edge_pos < n_edges, e_chunk, 0.0)
        acc_ref[...] += jnp.dot(onehot, e_chunk, preferred_element_type=jnp.float32)

        # Finalize: run the node MLP once all edge chunks have been reduced.
        @pl.when(k == pl.num_programs(1) - 1)
        def _():
            w0a, w0b, b0 = (r[...] for r in w[:3])
            hidden = [(w[3 + 2 * l][...], w[4 + 2 * l][...]) for l in range(n_layers)]
            wo, bo, g, bt = (r[...] for r in w[nw - 4:nw])

            xv = x_ref[...]       # [tn, C] f32 (residual)
            msg = acc_ref[...]    # [tn, C] f32 aggregated messages
            h = (jnp.dot(xv.astype(compute_dtype), w0a, preferred_element_type=jnp.float32)
                 + jnp.dot(msg.astype(compute_dtype), w0b, preferred_element_type=jnp.float32)
                 + b0)
            out_ref[...] = _mlp_tail(h, hidden, wo, bo, g, bt, layer_norm, xv,
                                     compute_dtype, out_ref.dtype, eps)

    return kernel


def node_conv(x, e, recv, p, n_layers, layer_norm, *,
              compute_dtype=jnp.float32, node_tile=256, edge_tile=512):
    N, C = x.shape
    E = e.shape[0]
    cd = compute_dtype
    tn = min(_round_up(node_tile, 8), _round_up(N, 8))
    te = min(_round_up(edge_tile, 128), _round_up(E, 128))
    grid = (pl.cdiv(N, tn), pl.cdiv(E, te))

    w0 = p["w0"]
    weights = [w0[:C].astype(cd), w0[C:].astype(cd), p["b0"]]
    for l in range(n_layers):
        weights += [p["wh"][l].astype(cd), p["bh"][l]]
    weights += [p["wo"].astype(cd), p["bo"], p["g"], p["bt"]]

    kernel = _make_node_kernel(n_layers, layer_norm, cd, E)
    in_specs = [
        pl.BlockSpec((1, te), lambda n, k: (0, k)),   # recv indices (lane-major)
        pl.BlockSpec((te, C), lambda n, k: (k, 0)),   # edge-message chunk (e_new)
        pl.BlockSpec((tn, C), lambda n, k: (n, 0)),   # x rows (residual + concat half)
    ] + [_full_spec(w) for w in weights]

    # TODO(synk): for very large E the one-hot scatter is O(N*E*C) MXU work; a
    # sorted/segmented scatter with scalar-prefetched offsets would be cheaper.
    return pl.pallas_call(
        kernel,
        out_shape=jax.ShapeDtypeStruct((N, C), jnp.float32),
        grid=grid,
        in_specs=in_specs,
        out_specs=pl.BlockSpec((tn, C), lambda n, k: (n, 0)),
        scratch_shapes=[pltpu.VMEM((tn, C), jnp.float32)],
        compiler_params=pltpu.CompilerParams(
            dimension_semantics=("parallel", "arbitrary")),
    )(recv.reshape(1, E).astype(jnp.int32), e, x, *weights)


# ---------------------------------------------------------------------------
# parameters (deterministic, PyTorch-Linear-style U(-1/sqrt(fan_in), ..) init)
# ---------------------------------------------------------------------------
def init_mlp_params(key, in_dim, h_dim, out_dim, n_layers):
    ks = jax.random.split(key, 2 * (n_layers + 2))

    def lin(kw, kb, fi, fo):
        bound = 1.0 / np.sqrt(fi)
        w = jax.random.uniform(kw, (fi, fo), jnp.float32, -bound, bound)  # [in, out]
        b = jax.random.uniform(kb, (1, fo), jnp.float32, -bound, bound)
        return w, b

    w0, b0 = lin(ks[0], ks[1], in_dim, h_dim)
    wh, bh = [], []
    for l in range(n_layers):
        w, b = lin(ks[2 + 2 * l], ks[3 + 2 * l], h_dim, h_dim)
        wh.append(w)
        bh.append(b)
    wo, bo = lin(ks[2 + 2 * n_layers], ks[3 + 2 * n_layers], h_dim, out_dim)
    g = jnp.ones((1, out_dim), jnp.float32)    # GroupNorm weight
    bt = jnp.zeros((1, out_dim), jnp.float32)  # GroupNorm bias
    return dict(w0=w0, b0=b0, wh=wh, bh=bh, wo=wo, bo=bo, g=g, bt=bt)


# ---------------------------------------------------------------------------
# GraphConv forward
# ---------------------------------------------------------------------------
def graph_conv_forward(x, edge_index, e, edge_params, node_params,
                       n_layers, layer_norm, aggr, *,
                       compute_dtype=jnp.float32,
                       edge_row_tile=512, node_tile=256, edge_tile=512):
    if aggr != "sum":
        # TODO(synk): 'mean'/'max' scatter reductions not implemented
        raise NotImplementedError("only 'sum' aggregation implemented")

    send = edge_index[0].astype(jnp.int32)
    recv = edge_index[1].astype(jnp.int32)

    # EdgeConv: e_new = e + MLP([x_i, x_j, e])  (gather + concat fused in-kernel)
    e_new = edge_conv(x, send, recv, e, edge_params, n_layers, layer_norm,
                      compute_dtype=compute_dtype, row_tile=edge_row_tile)

    # NodeConv: x_new = x + MLP([x, scatter_sum(e_new, recv)])
    #   scatter + MLP fused in one kernel (no msg HBM round-trip).
    x_new = node_conv(x, e_new, recv, node_params, n_layers, layer_norm,
                      compute_dtype=compute_dtype,
                      node_tile=node_tile, edge_tile=edge_tile)
    return x_new, e_new


# ---------------------------------------------------------------------------
# pure-JAX reference (for correctness check only)
# ---------------------------------------------------------------------------
def mlp_ref(xcat, p, n_layers, layer_norm, eps=1e-5):
    h = jnp.maximum(xcat @ p["w0"] + p["b0"], 0.0)
    for l in range(n_layers):
        h = jnp.maximum(h @ p["wh"][l] + p["bh"][l], 0.0)
    y = h @ p["wo"] + p["bo"]
    if layer_norm:
        m = y.mean(-1, keepdims=True)
        v = ((y - m) ** 2).mean(-1, keepdims=True)
        y = (y - m) / jnp.sqrt(v + eps) * p["g"] + p["bt"]
    return y


if __name__ == "__main__":
    in_dim = 32      # == out_dim so the module's residual adds are well-formed
    h_dim = 64
    out_dim = 32
    n_layers = 1
    layer_norm = True
    aggr = "sum"
    N, E = 48, 200   # deliberately not tile multiples: exercises cdiv grids + tail masking

    key = jax.random.PRNGKey(0)
    kx, ke, ki, kpe, kpn = jax.random.split(key, 5)
    x = jax.random.normal(kx, (N, in_dim), jnp.float32)
    e = jax.random.normal(ke, (E, in_dim), jnp.float32)
    edge_index = jax.random.randint(ki, (2, E), 0, N, dtype=jnp.int32)

    edge_params = init_mlp_params(kpe, 3 * in_dim, h_dim, out_dim, n_layers)
    node_params = init_mlp_params(kpn, 2 * in_dim, h_dim, out_dim, n_layers)

    fwd = functools.partial(graph_conv_forward, n_layers=n_layers,
                            layer_norm=layer_norm, aggr=aggr)

    # f32 run with small tiles so every grid has >1 step and a partial tail block.
    x_new, e_new = fwd(x, edge_index, e, edge_params, node_params,
                       compute_dtype=jnp.float32,
                       edge_row_tile=64, node_tile=32, edge_tile=128)
    jax.block_until_ready((x_new, e_new))

    # pure-JAX reference
    x_j = x[edge_index[0]]
    x_i = x[edge_index[1]]
    e_new_ref = e + mlp_ref(jnp.concatenate([x_i, x_j, e], axis=1),
                            edge_params, n_layers, layer_norm)
    msg_ref = jax.ops.segment_sum(e_new_ref, edge_index[1], num_segments=N)
    x_new_ref = x + mlp_ref(jnp.concatenate([x, msg_ref], axis=1),
                            node_params, n_layers, layer_norm)

    np.testing.assert_allclose(np.asarray(e_new), np.asarray(e_new_ref),
                               rtol=1e-5, atol=1e-4)
    np.testing.assert_allclose(np.asarray(x_new), np.asarray(x_new_ref),
                               rtol=1e-5, atol=1e-4)

    # bf16-operand run (v6e/v7x fast path: halves MXU-operand/VMEM traffic,
    # f32 accumulation), default (large) tiles; checked against the f32
    # reference with loose tolerance.
    x_new_bf, e_new_bf = fwd(x, edge_index, e, edge_params, node_params,
                             compute_dtype=jnp.bfloat16)
    jax.block_until_ready((x_new_bf, e_new_bf))
    np.testing.assert_allclose(np.asarray(e_new_bf), np.asarray(e_new_ref),
                               rtol=5e-2, atol=5e-2)
    np.testing.assert_allclose(np.asarray(x_new_bf), np.asarray(x_new_ref),
                               rtol=5e-2, atol=5e-2)

    print("KERNEL_OK")
</pallas_src>

<mosaic_0001>
module attributes {stable_mosaic.version = 11 : i64} {
  func.func @kernel(%arg0: i32, %arg1: memref<64x1xi32, #tpu.memory_space<vmem>>, %arg2: memref<64x1xi32, #tpu.memory_space<vmem>>, %arg3: memref<64x32xf32, #tpu.memory_space<vmem>>, %arg4: memref<48x32xf32, #tpu.memory_space<vmem>>, %arg5: memref<32x64xf32, #tpu.memory_space<vmem>>, %arg6: memref<32x64xf32, #tpu.memory_space<vmem>>, %arg7: memref<32x64xf32, #tpu.memory_space<vmem>>, %arg8: memref<1x64xf32, #tpu.memory_space<vmem>>, %arg9: memref<64x64xf32, #tpu.memory_space<vmem>>, %arg10: memref<1x64xf32, #tpu.memory_space<vmem>>, %arg11: memref<64x32xf32, #tpu.memory_space<vmem>>, %arg12: memref<1x32xf32, #tpu.memory_space<vmem>>, %arg13: memref<1x32xf32, #tpu.memory_space<vmem>>, %arg14: memref<1x32xf32, #tpu.memory_space<vmem>>, %arg15: memref<64x32xf32, #tpu.memory_space<vmem>>) attributes {dimension_semantics = [#tpu.dimension_semantics<parallel>], iteration_bounds = array<i64: 4>, scalar_prefetch = 0 : i64, scratch_operands = 0 : i64, tpu.core_type = #tpu.core_type<tc>, window_params = [{transform_indices = @transform_0, window_bounds = array<i64: 64, 1>}, {transform_indices = @transform_1, window_bounds = array<i64: 64, 1>}, {transform_indices = @transform_2, window_bounds = array<i64: 64, 32>}, {pipeline_mode = #tpu.pipeline_mode<synchronous>, transform_indices = @transform_3, window_bounds = array<i64: 48, 32>}, {pipeline_mode = #tpu.pipeline_mode<synchronous>, transform_indices = @transform_4, window_bounds = array<i64: 32, 64>}, {pipeline_mode = #tpu.pipeline_mode<synchronous>, transform_indices = @transform_5, window_bounds = array<i64: 32, 64>}, {pipeline_mode = #tpu.pipeline_mode<synchronous>, transform_indices = @transform_6, window_bounds = array<i64: 32, 64>}, {pipeline_mode = #tpu.pipeline_mode<synchronous>, transform_indices = @transform_7, window_bounds = array<i64: 1, 64>}, {pipeline_mode = #tpu.pipeline_mode<synchronous>, transform_indices = @transform_8, window_bounds = array<i64: 64, 64>}, {pipeline_mode = #tpu.pipeline_mode<synchronous>, transform_indices = @transform_9, window_bounds = array<i64: 1, 64>}, {pipeline_mode = #tpu.pipeline_mode<synchronous>, transform_indices = @transform_10, window_bounds = array<i64: 64, 32>}, {pipeline_mode = #tpu.pipeline_mode<synchronous>, transform_indices = @transform_11, window_bounds = array<i64: 1, 32>}, {pipeline_mode = #tpu.pipeline_mode<synchronous>, transform_indices = @transform_12, window_bounds = array<i64: 1, 32>}, {pipeline_mode = #tpu.pipeline_mode<synchronous>, transform_indices = @transform_13, window_bounds = array<i64: 1, 32>}, {transform_indices = @transform_14, window_bounds = array<i64: 64, 32>}]} {
    %c0 = arith.constant 0 : index
    %c0_0 = arith.constant 0 : index
    %0 = vector.load %arg5[%c0, %c0_0] : memref<32x64xf32, #tpu.memory_space<vmem>>, vector<32x64xf32>
    %c0_1 = arith.constant 0 : index
    %c0_2 = arith.constant 0 : index
    %1 = vector.load %arg6[%c0_1, %c0_2] : memref<32x64xf32, #tpu.memory_space<vmem>>, vector<32x64xf32>
    %c0_3 = arith.constant 0 : index
    %c0_4 = arith.constant 0 : index
    %2 = vector.load %arg7[%c0_3, %c0_4] : memref<32x64xf32, #tpu.memory_space<vmem>>, vector<32x64xf32>
    %c0_5 = arith.constant 0 : index
    %c0_6 = arith.constant 0 : index
    %3 = vector.load %arg8[%c0_5, %c0_6] : memref<1x64xf32, #tpu.memory_space<vmem>>, vector<1x64xf32>
    %c0_7 = arith.constant 0 : index
    %c0_8 = arith.constant 0 : index
    %4 = vector.load %arg9[%c0_7, %c0_8] : memref<64x64xf32, #tpu.memory_space<vmem>>, vector<64x64xf32>
    %c0_9 = arith.constant 0 : index
    %c0_10 = arith.constant 0 : index
    %5 = vector.load %arg10[%c0_9, %c0_10] : memref<1x64xf32, #tpu.memory_space<vmem>>, vector<1x64xf32>
    %c0_11 = arith.constant 0 : index
    %c0_12 = arith.constant 0 : index
    %6 = vector.load %arg11[%c0_11, %c0_12] : memref<64x32xf32, #tpu.memory_space<vmem>>, vector<64x32xf32>
    %c0_13 = arith.constant 0 : index
    %c0_14 = arith.constant 0 : index
    %7 = vector.load %arg12[%c0_13, %c0_14] : memref<1x32xf32, #tpu.memory_space<vmem>>, vector<1x32xf32>
    %c0_15 = arith.constant 0 : index
    %c0_16 = arith.constant 0 : index
    %8 = vector.load %arg13[%c0_15, %c0_16] : memref<1x32xf32, #tpu.memory_space<vmem>>, vector<1x32xf32>
    %c0_17 = arith.constant 0 : index
    %c0_18 = arith.constant 0 : index
    %9 = vector.load %arg14[%c0_17, %c0_18] : memref<1x32xf32, #tpu.memory_space<vmem>>, vector<1x32xf32>
    %c0_19 = arith.constant 0 : index
    %c0_20 = arith.constant 0 : index
    %10 = vector.load %arg4[%c0_19, %c0_20] : memref<48x32xf32, #tpu.memory_space<vmem>>, vector<48x32xf32>
    %c0_21 = arith.constant 0 : index
    %c0_22 = arith.constant 0 : index
    %11 = vector.load %arg3[%c0_21, %c0_22] : memref<64x32xf32, #tpu.memory_space<vmem>>, vector<64x32xf32>
    %12 = tpu.iota {dimensions = array<i32: 1>} : vector<64x48xi32>
    %c0_23 = arith.constant 0 : index
    %c0_24 = arith.constant 0 : index
    %13 = vector.load %arg1[%c0_23, %c0_24] : memref<64x1xi32, #tpu.memory_space<vmem>>, vector<64x1xi32>
    %14 = vector.broadcast %13 : vector<64x1xi32> to vector<64x48xi32>
    %15 = arith.cmpi eq, %12, %14 : vector<64x48xi32>
    %16 = arith.extui %15 : vector<64x48xi1> to vector<64x48xi32>
    %17 = arith.sitofp %16 : vector<64x48xi32> to vector<64x48xf32>
    %c0_25 = arith.constant 0 : index
    %c0_26 = arith.constant 0 : index
    %18 = vector.load %arg2[%c0_25, %c0_26] : memref<64x1xi32, #tpu.memory_space<vmem>>, vector<64x1xi32>
    %19 = vector.broadcast %18 : vector<64x1xi32> to vector<64x48xi32>
    %20 = arith.cmpi eq, %12, %19 : vector<64x48xi32>
    %21 = arith.extui %20 : vector<64x48xi1> to vector<64x48xi32>
    %22 = arith.sitofp %21 : vector<64x48xi32> to vector<64x48xf32>
    %cst = arith.constant dense<0.000000e+00> : vector<64x32xf32>
    %23 = tpu.matmul %17, %10, %cst {dimension_numbers = #tpu.dot_dimension_numbers<[1], [0], [0], [1], [0, 0, 1, 1], [], []>} : vector<64x48xf32>, vector<48x32xf32>, vector<64x32xf32> -> vector<64x32xf32>
    %cst_27 = arith.constant dense<0.000000e+00> : vector<64x32xf32>
    %24 = tpu.matmul %22, %10, %cst_27 {dimension_numbers = #tpu.dot_dimension_numbers<[1], [0], [0], [1], [0, 0, 1, 1], [], []>} : vector<64x48xf32>, vector<48x32xf32>, vector<64x32xf32> -> vector<64x32xf32>
    %cst_28 = arith.constant dense<0.000000e+00> : vector<64x64xf32>
    %25 = tpu.matmul %24, %0, %cst_28 {dimension_numbers = #tpu.dot_dimension_numbers<[1], [0], [0], [1], [0, 0, 1, 1], [], []>} : vector<64x32xf32>, vector<32x64xf32>, vector<64x64xf32> -> vector<64x64xf32>
    %cst_29 = arith.constant dense<0.000000e+00> : vector<64x64xf32>
    %26 = tpu.matmul %23, %1, %cst_29 {dimension_numbers = #tpu.dot_dimension_numbers<[1], [0], [0], [1], [0, 0, 1, 1], [], []>} : vector<64x32xf32>, vector<32x64xf32>, vector<64x64xf32> -> vector<64x64xf32>
    %27 = arith.addf %25, %26 : vector<64x64xf32>
    %cst_30 = arith.constant dense<0.000000e+00> : vector<64x64xf32>
    %28 = tpu.matmul %11, %2, %cst_30 {dimension_numbers = #tpu.dot_dimension_numbers<[1], [0], [0], [1], [0, 0, 1, 1], [], []>} : vector<64x32xf32>, vector<32x64xf32>, vector<64x64xf32> -> vector<64x64xf32>
    %29 = arith.addf %27, %28 : vector<64x64xf32>
    %30 = vector.broadcast %3 : vector<1x64xf32> to vector<64x64xf32>
    %31 = arith.addf %29, %30 : vector<64x64xf32>
    %cst_31 = arith.constant 0.000000e+00 : f32
    %32 = vector.broadcast %cst_31 : f32 to vector<64x64xf32>
    %33 = arith.maximumf %31, %32 : vector<64x64xf32>
    %cst_32 = arith.constant dense<0.000000e+00> : vector<64x64xf32>
    %34 = tpu.matmul %33, %4, %cst_32 {dimension_numbers = #tpu.dot_dimension_numbers<[1], [0], [0], [1], [0, 0, 1, 1], [], []>} : vector<64x64xf32>, vector<64x64xf32>, vector<64x64xf32> -> vector<64x64xf32>
    %35 = vector.broadcast %5 : vector<1x64xf32> to vector<64x64xf32>
    %36 = arith.addf %34, %35 : vector<64x64xf32>
    %cst_33 = arith.constant 0.000000e+00 : f32
    %37 = vector.broadcast %cst_33 : f32 to vector<64x64xf32>
    %38 = arith.maximumf %36, %37 : vector<64x64xf32>
    %cst_34 = arith.constant dense<0.000000e+00> : vector<64x32xf32>
    %39 = tpu.matmul %38, %6, %cst_34 {dimension_numbers = #tpu.dot_dimension_numbers<[1], [0], [0], [1], [0, 0, 1, 1], [], []>} : vector<64x64xf32>, vector<64x32xf32>, vector<64x32xf32> -> vector<64x32xf32>
    %40 = vector.broadcast %7 : vector<1x32xf32> to vector<64x32xf32>
    %41 = arith.addf %39, %40 : vector<64x32xf32>
    %cst_35 = arith.constant dense<0.000000e+00> : vector<64xf32>
    %42 = vector.multi_reduction <add>, %41, %cst_35 [1] : vector<64x32xf32> to vector<64xf32>
    %43 = vector.shape_cast %42 : vector<64xf32> to vector<64x1xf32>
    %cst_36 = arith.constant 3.200000e+01 : f32
    %44 = vector.broadcast %cst_36 : f32 to vector<64x1xf32>
    %45 = arith.divf %43, %44 : vector<64x1xf32>
    %46 = vector.broadcast %45 : vector<64x1xf32> to vector<64x32xf32>
    %47 = arith.subf %41, %46 : vector<64x32xf32>
    %48 = arith.mulf %47, %47 : vector<64x32xf32>
    %cst_37 = arith.constant dense<0.000000e+00> : vector<64xf32>
    %49 = vector.multi_reduction <add>, %48, %cst_37 [1] : vector<64x32xf32> to vector<64xf32>
    %50 = vector.shape_cast %49 : vector<64xf32> to vector<64x1xf32>
    %cst_38 = arith.constant 3.200000e+01 : f32
    %51 = vector.broadcast %cst_38 : f32 to vector<64x1xf32>
    %52 = arith.divf %50, %51 : vector<64x1xf32>
    %53 = vector.broadcast %45 : vector<64x1xf32> to vector<64x32xf32>
    %54 = arith.subf %41, %53 : vector<64x32xf32>
    %cst_39 = arith.constant 9.99999974E-6 : f32
    %55 = vector.broadcast %cst_39 : f32 to vector<64x1xf32>
    %56 = arith.addf %52, %55 : vector<64x1xf32>
    %57 = math.rsqrt %56 : vector<64x1xf32>
    %58 = vector.broadcast %57 : vector<64x1xf32> to vector<64x32xf32>
    %59 = arith.mulf %54, %58 : vector<64x32xf32>
    %60 = vector.broadcast %8 : vector<1x32xf32> to vector<64x32xf32>
    %61 = arith.mulf %59, %60 : vector<64x32xf32>
    %62 = vector.broadcast %9 : vector<1x32xf32> to vector<64x32xf32>
    %63 = arith.addf %61, %62 : vector<64x32xf32>
    %64 = arith.addf %11, %63 : vector<64x32xf32>
    %c0_40 = arith.constant 0 : index
    %c0_41 = arith.constant 0 : index
    %65 = vector.load %arg15[%c0_40, %c0_41] : memref<64x32xf32, #tpu.memory_space<vmem>>, vector<64x32xf32>
    tpu.vector_store %arg15[%c0_40, %c0_41], %64 {strides = array<i32>} : memref<64x32xf32, #tpu.memory_space<vmem>>, vector<64x32xf32>,
    return
  }
  func.func @transform_0(%arg0: i32) -> (i32, i32) {
    %c0_i32 = arith.constant 0 : i32
    %c0_i32_0 = arith.constant 0 : i32
    return %arg0, %c0_i32 : i32, i32
  }
  func.func @transform_1(%arg0: i32) -> (i32, i32) {
    %c0_i32 = arith.constant 0 : i32
    %c0_i32_0 = arith.constant 0 : i32
    return %arg0, %c0_i32 : i32, i32
  }
  func.func @transform_2(%arg0: i32) -> (i32, i32) {
    %c0_i32 = arith.constant 0 : i32
    %c0_i32_0 = arith.constant 0 : i32
    return %arg0, %c0_i32 : i32, i32
  }
  func.func @transform_3(%arg0: i32) -> (i32, i32) {
    %c0_i32 = arith.constant 0 : i32
    %c0_i32_0 = arith.constant 0 : i32
    %c0_i32_1 = arith.constant 0 : i32
    return %c0_i32, %c0_i32_0 : i32, i32
  }
  func.func @transform_4(%arg0: i32) -> (i32, i32) {
    %c0_i32 = arith.constant 0 : i32
    %c0_i32_0 = arith.constant 0 : i32
    %c0_i32_1 = arith.constant 0 : i32
    return %c0_i32, %c0_i32_0 : i32, i32
  }
  func.func @transform_5(%arg0: i32) -> (i32, i32) {
    %c0_i32 = arith.constant 0 : i32
    %c0_i32_0 = arith.constant 0 : i32
    %c0_i32_1 = arith.constant 0 : i32
    return %c0_i32, %c0_i32_0 : i32, i32
  }
  func.func @transform_6(%arg0: i32) -> (i32, i32) {
    %c0_i32 = arith.constant 0 : i32
    %c0_i32_0 = arith.constant 0 : i32
    %c0_i32_1 = arith.constant 0 : i32
    return %c0_i32, %c0_i32_0 : i32, i32
  }
  func.func @transform_7(%arg0: i32) -> (i32, i32) {
    %c0_i32 = arith.constant 0 : i32
    %c0_i32_0 = arith.constant 0 : i32
    %c0_i32_1 = arith.constant 0 : i32
    return %c0_i32, %c0_i32_0 : i32, i32
  }
  func.func @transform_8(%arg0: i32) -> (i32, i32) {
    %c0_i32 = arith.constant 0 : i32
    %c0_i32_0 = arith.constant 0 : i32
    %c0_i32_1 = arith.constant 0 : i32
    return %c0_i32, %c0_i32_0 : i32, i32
  }
  func.func @transform_9(%arg0: i32) -> (i32, i32) {
    %c0_i32 = arith.constant 0 : i32
    %c0_i32_0 = arith.constant 0 : i32
    %c0_i32_1 = arith.constant 0 : i32
    return %c0_i32, %c0_i32_0 : i32, i32
  }
  func.func @transform_10(%arg0: i32) -> (i32, i32) {
    %c0_i32 = arith.constant 0 : i32
    %c0_i32_0 = arith.constant 0 : i32
    %c0_i32_1 = arith.constant 0 : i32
    return %c0_i32, %c0_i32_0 : i32, i32
  }
  func.func @transform_11(%arg0: i32) -> (i32, i32) {
    %c0_i32 = arith.constant 0 : i32
    %c0_i32_0 = arith.constant 0 : i32
    %c0_i32_1 = arith.constant 0 : i32
    return %c0_i32, %c0_i32_0 : i32, i32
  }
  func.func @transform_12(%arg0: i32) -> (i32, i32) {
    %c0_i32 = arith.constant 0 : i32
    %c0_i32_0 = arith.constant 0 : i32
    %c0_i32_1 = arith.constant 0 : i32
    return %c0_i32, %c0_i32_0 : i32, i32
  }
  func.func @transform_13(%arg0: i32) -> (i32, i32) {
    %c0_i32 = arith.constant 0 : i32
    %c0_i32_0 = arith.constant 0 : i32
    %c0_i32_1 = arith.constant 0 : i32
    return %c0_i32, %c0_i32_0 : i32, i32
  }
  func.func @transform_14(%arg0: i32) -> (i32, i32) {
    %c0_i32 = arith.constant 0 : i32
    %c0_i32_0 = arith.constant 0 : i32
    return %arg0, %c0_i32 : i32, i32
  }
}

</mosaic_0001>

<bundles_post_ra>
// kernel: tpu_custom_call.1
= control target key start
LH: loop header
LB: loop body
LE: loop exit
PB: predicated region body
PF: predicated region fallthrough
CT: control target
= control target key end

     0   :  { %s3199_s0 = inlined_call_operand.vmem [shape: s32[200,1], index: 0, kind: input, shape index: {}]   ;;  %s3200_s1 = inlined_call_operand.vmem [shape: s32[200,1], index: 1, kind: input, shape index: {}]   ;;  %s3201_s2 = inlined_call_operand.vmem [shape: f32[200,32], index: 2, kind: input, shape index: {}]   ;;  %s3202_s3 = inlined_call_operand.vmem [shape: f32[48,32], index: 3, kind: input, shape index: {}]   ;;  %s3203_s4 = inlined_call_operand.vmem [shape: f32[32,64], index: 4, kind: input, shape index: {}]   ;;  %s3204_s5 = inlined_call_operand.vmem [shape: f32[32,64], index: 5, kind: input, shape index: {}]   ;;  %s3205_s6 = inlined_call_operand.vmem [shape: f32[32,64], index: 6, kind: input, shape index: {}]   ;;  %s3206_s7 = inlined_call_operand.vmem [shape: f32[1,64], index: 7, kind: input, shape index: {}]   ;;  %s3207_s8 = inlined_call_operand.vmem [shape: f32[64,64], index: 8, kind: input, shape index: {}]   ;;  %s3208_s9 = inlined_call_operand.vmem [shape: f32[1,64], index: 9, kind: input, shape index: {}]   ;;  %s3209_s10 = inlined_call_operand.vmem [shape: f32[64,32], index: 10, kind: input, shape index: {}]   ;;  %s3210_s11 = inlined_call_operand.vmem [shape: f32[1,32], index: 11, kind: input, shape index: {}]   ;;  %s3211_s12 = inlined_call_operand.vmem [shape: f32[1,32], index: 12, kind: input, shape index: {}]   ;;  %s3212_s13 = inlined_call_operand.vmem [shape: f32[1,32], index: 13, kind: input, shape index: {}]   ;;  %s3213_s14 = inlined_call_operand.vmem [shape: f32[200,32], index: 14, kind: output, shape index: {}]  }
   0x1   :  { %3214 = sst [smem:[#allocation3_spill]] %s3199_s0 }
   0x2   :  { %3215 = sst [smem:[#allocation4_spill]] %s3200_s1 }
   0x3   :  { %3216 = sst [smem:[#allocation5_spill]] %s3201_s2 }
   0x4   :  { %s2756_s29 = smov 0   ;;  %s2758_s30 = smov 0  }
   0x5   :  { %s2760_s15 = smov 0  }
   0x6 LB: > { %s2769_s16 = sadd.s32 4294967295, %s2645_s15   ;;  %s2771_s17 = sadd.s32 1, %s2645_s15   ;;  %s2645_s15 = sphi %s2760_s15, %s3226_s15   ;;  %s2641_s30 = sphi %s2758_s30, %s3225_s30   ;;  %s2637_s29 = sphi %s2756_s29, %s3224_s29  }
   0x7   : > { %s337_s18 = ssub.s32 %s2645_s15, %s2771_s17  ;;  %s340_s19 = sadd.s32 1, %s2641_s30 }
   0x8   : > { %p338_p0 = scmp.eq.s32.totalorder %s337_s18, 0  ;;  %p350_p1 = scmp.ne.s32.totalorder %s2641_s30, %s2637_s29 }
   0x9   : > { %p351_p2 = scmp.eq.s32.totalorder %s2769_s16, 3  ;;  %p2110_p3 = scmp.ge.s32.totalorder %s2645_s15, 1 }
   0xa   : > { %s2779_s20 = scalar_select %p338_p0, %s2641_s30, %s340_s19  }
   0xb   : > { %p2781_p4 = por %p351_p2, %p350_p1  ;;  %p459_p5 = scmp.lt.s32.totalorder %s2645_s15, 5 }
   0xd   : > { %p460_p6 = pnand %p2110_p3, %p459_p5 }
   0xe   : > { %s2786_s22 = sshll.u32 (!%p460_p6), %s2769_s16, 3  ;;  %s3218_s0 = sld [smem:[#allocation3_spill]] (!%p460_p6) }
   0xf   : > { %463 = sbr.rel (%p460_p6) target bundleno = 1338 (0x53a), region = 76  ;;  %p531_p7 = scmp.lt.s32.totalorder (!%p460_p6), %s2786_s22, 24 }
  0x10   : > { %s3219_s1 = sld [smem:[#allocation4_spill]] (!%p460_p6)  ;;  %s523_s23 = sand.u32 (!%p460_p6), 1, %s2637_s29  }
  0x11   : > { %s3220_s2 = sld [smem:[#allocation5_spill]] (!%p460_p6) }
  0x14   : > { %v611_v0 = vld [vmem:[%s3202_s3 + $0x28] sm:$0xff]  ;;  %v2679_v1 = vmov 0   ;;  %v610_v2 = vld [vmem:[%s3202_s3 + $0x20] sm:$0xff]  ;;  %s532_s27 = scalar_select %p531_p7, %s2786_s22, 24  ;;  %v609_v3 = vld [vmem:[%s3202_s3 + $0x18] sm:$0xff]  ;;  %v620_v24 = vlaneseq  ;;  %vm734_vm0 = vcmask 392192  }
  0x15   : > { %2574 = vset.pattern.permute.xlu1 %v2679_v1  ;;  %2573 = vset.pattern.permute.xlu0 %v2679_v1  ;;  %v608_v4 = vld [vmem:[%s3202_s3 + $0x10] sm:$0xff]  ;;  %v607_v7 = vld [vmem:[%s3202_s3 + $0x8] sm:$0xff]  ;;  %v606_v10 = vld [vmem:[%s3202_s3] sm:$0xff]  ;;  %v2680_v28 = vmov 0.0   ;;  %s1847_s28 = ssub.s32 (%p2781_p4), 25, %s2786_s22 }
  0x16   : > { %2311 = vmatprep.subr.mxu0 %v611_v0  ;;  %2335 = vmatprep.subr.mxu1 %v611_v0  ;;  %s2799_s18 = sshll.u32 %s532_s27, 3  ;;  %v580_v23 = vld [vmem:[%s3204_s5 + $0x18] sm:$0xff]  ;;  %v2831_v25 = vand.u32 127, %v620_v24  ;;  %v579_v34 = vld [vmem:[%s3204_s5 + $0x10] sm:$0xff]  ;;  %v578_v60 = vld [vmem:[%s3204_s5 + $0x8] sm:$0xff]  ;;  %s2111_s27 = sshll.u32 %s523_s23, 6 }
  0x17   : > { %2312 = vmatpush3.msra.mxu0 %v611_v0  ;;  %2336 = vmatpush3.msra.mxu1 %v611_v0  ;;  %s2805_s24 = scalar_lea.vmem %s3218_s0, %s2799_s18  ;;  %s548_s26 = scalar_lea.vmem %s3219_s1, %s2799_s18  ;;  %v577_v61 = vld [vmem:[%s3204_s5] sm:$0xff]  ;;  %v576_v62 = vld [vmem:[%s3203_s4 + $0x18] sm:$0xff] }
  0x18   : > { %2313 = vmatprep.subr.mxu0 %v610_v2  ;;  %2337 = vmatprep.subr.mxu1 %v610_v2  ;;  %v624_v5 = vld [vmem:[%s2805_s24 + $0x10] sm:$0xff]  ;;  %v622_v6 = vld [vmem:[%s2805_s24] sm:$0xff]  ;;  %v625_v8 = vld [vmem:[%s2805_s24 + $0x18] sm:$0xff]  ;;  %s3108_s29 = scalar_lea.vmem [#allocation2], %s2111_s27   ;;  %p1848_p8 = scmp.lt.s32.totalorder (%p2781_p4), %s1847_s28, 8 }
  0x19   : > { %2314 = vmatpush3.msra.mxu0 %v610_v2  ;;  %2338 = vmatpush3.msra.mxu1 %v610_v2  ;;  %v623_v9 = vld [vmem:[%s2805_s24 + $0x8] sm:$0xff]  ;;  %v626_v12 = vld [vmem:[%s2805_s24 + $0x20] sm:$0xff]  ;;  %v629_v13 = vld [vmem:[%s2805_s24 + $0x38] sm:$0xff] }
  0x1a   : > { %2315 = vmatprep.subr.mxu0 %v609_v3  ;;  %2339 = vmatprep.subr.mxu1 %v609_v3  ;;  %v627_v11 = vld [vmem:[%s2805_s24 + $0x28] sm:$0xff]  ;;  %v628_v14 = vld [vmem:[%s2805_s24 + $0x30] sm:$0xff]  ;;  %v678_v16 = vld [vmem:[%s548_s26] sm:$0xff]  ;;  %s2904_s24 = scalar_lea.vmem %s3220_s2, %s2799_s18  ;;  %s2212_s18 = sshll.u32 (%p2781_p4), %s2769_s16, 6 }
  0x1b   : > { %2316 = vmatpush3.msra.mxu0 %v609_v3  ;;  %2340 = vmatpush3.msra.mxu1 %v609_v3  ;;  %v679_v15 = vld [vmem:[%s548_s26 + $0x8] sm:$0xff]  ;;  %v681_v17 = vld [vmem:[%s548_s26 + $0x18] sm:$0xff]  ;;  %v680_v18 = vld [vmem:[%s548_s26 + $0x10] sm:$0xff]  ;;  %s3145_s19 = scalar_lea.vmem (%p2781_p4), %s3213_s14, %s2212_s18  }
  0x1c   : > { %637 = vperm.xlu1 %2574, %v624_v5   ;;  %631 = vperm.xlu0 %2573, %v622_v6   ;;  %v683_v19 = vld [vmem:[%s548_s26 + $0x28] sm:$0xff]  ;;  %v682_v20 = vld [vmem:[%s548_s26 + $0x20] sm:$0xff]  ;;  %v685_v21 = vld [vmem:[%s548_s26 + $0x38] sm:$0xff] }
  0x1d   : > { %2317 = vmatprep.subr.mxu0 %v608_v4  ;;  %2341 = vmatprep.subr.mxu1 %v608_v4  ;;  %v684_v22 = vld [vmem:[%s548_s26 + $0x30] sm:$0xff]  ;;  %v584_v63 = vld [vmem:[%s3205_s6 + $0x18] sm:$0xff]  ;;  %v2911_v6 = vld [vmem:[%s2904_s24] sm:$0xff] }
  0x1e   : > { %2318 = vmatpush3.msra.mxu0 %v608_v4  ;;  %2342 = vmatpush3.msra.mxu1 %v608_v4  ;;  %v583_v2 = vld [vmem:[%s3205_s6 + $0x10] sm:$0xff]  ;;  %v582_v4 = vld [vmem:[%s3205_s6 + $0x8] sm:$0xff] }
  0x1f   : > { %2319 = vmatprep.subr.mxu0 %v607_v7  ;;  %2343 = vmatprep.subr.mxu1 %v607_v7  ;;  %v2959_v24 = vld [vmem:[%s2904_s24 + $0x30] sm:$0xff] }
  0x20   : > { %640 = vperm.xlu1 %2574, %v625_v8   ;;  %634 = vperm.xlu0 %2573, %v623_v9   ;;  %v2921_v9 = vld [vmem:[%s2904_s24 + $0x8] sm:$0xff] }
  0x21   : > { %2320 = vmatpush3.msra.mxu0 %v607_v7  ;;  %2344 = vmatpush3.msra.mxu1 %v607_v7  ;;  %v581_v7 = vld [vmem:[%s3205_s6] sm:$0xff] }
  0x22   : > { %2321 = vmatprep.subr.mxu0 %v606_v10  ;;  %2345 = vmatprep.subr.mxu1 %v606_v10 }
  0x23   : > { %2322 = vmatpush3.msra.mxu0 %v606_v10  ;;  %2346 = vmatpush3.msra.mxu1 %v606_v10 }
  0x24   : > { %646 = vperm.xlu1 %2574, %v627_v11   ;;  %643 = vperm.xlu0 %2573, %v626_v12   ;;  %v2924_v11 = vld [vmem:[%s2904_s24 + $0x10] sm:$0xff] }
  0x25   : > { %2475 = vmatprep.subr.mxu1 %v580_v23  ;;  %2359 = vmatprep.subr.mxu0 %v580_v23  ;;  %v575_v12 = vld [vmem:[%s3203_s4 + $0x10] sm:$0xff] }
  0x28   : > { %652 = vperm.xlu1 %2574, %v629_v13   ;;  %649 = vperm.xlu0 %2573, %v628_v14  }
  0x2c   : > { %690 = vperm.xlu1 %2574, %v679_v15   ;;  %687 = vperm.xlu0 %2573, %v678_v16   ;;  %v574_v15 = vld [vmem:[%s3203_s4 + $0x8] sm:$0xff] }
  0x30   : > { %696 = vperm.xlu1 %2574, %v681_v17   ;;  %693 = vperm.xlu0 %2573, %v680_v18   ;;  %v573_v18 = vld [vmem:[%s3203_s4] sm:$0xff] }
  0x34   : > { %702 = vperm.xlu1 %2574, %v683_v19   ;;  %699 = vperm.xlu0 %2573, %v682_v20   ;;  %v2943_v19 = vld [vmem:[%s2904_s24 + $0x18] sm:$0xff]  ;;  %v2947_v20 = vld [vmem:[%s2904_s24 + $0x20] sm:$0xff] }
  0x38   : > { %708 = vperm.xlu1 %2574, %v685_v21   ;;  %705 = vperm.xlu0 %2573, %v684_v22  }
  0x97   : > { %v638_v26 = vpop.permute.xlu1 %637  ;;  %v632_v27 = vpop.permute.xlu0 %631 }
  0x98   : > { %vm654_vm1 = vcmp.eq.s32.totalorder %v2831_v25, %v632_v27  ;;  %vm656_vm2 = vcmp.eq.s32.totalorder %v2831_v25, %v638_v26  ;;  %v2967_v27 = vld [vmem:[%s2904_s24 + $0x38] sm:$0xff] }
  0x99   : > { %v2118_v29 = vsel %vm654_vm1, 1.0, %v2680_v28  ;;  %v2120_v32 = vsel %vm656_vm2, 1.0, %v2680_v28  ;;  %vm1417_vm2 = vcmask 523264  }
  0x9a   : > { %2323 = vmatprep.mubr.msk.f32.mxu0 %vm734_vm0, %v2118_v29 }
  0x9b   : > { %v641_v30 = vpop.permute.xlu1 %640  ;;  %v635_v31 = vpop.permute.xlu0 %634 }
  0x9c   : > { %vm655_vm3 = vcmp.eq.s32.totalorder %v2831_v25, %v635_v31  ;;  %vm657_vm4 = vcmp.eq.s32.totalorder %v2831_v25, %v641_v30  ;;  %v593_v30 = vld [vmem:[%s3207_s8 + $0x38] sm:$0xff]  ;;  %v592_v31 = vld [vmem:[%s3207_s8 + $0x30] sm:$0xff] }
  0x9d   : > { %v2119_v33 = vsel %vm655_vm3, 1.0, %v2680_v28  ;;  %v2121_v37 = vsel %vm657_vm4, 1.0, %v2680_v28 }
  0x9e   : > { %2324 = vmatmul.mubr.msk.f32.vlgmr.msra.gmra.mxu0 %vm734_vm0, %v2119_v33  ;;  %v590_v33 = vld [vmem:[%s3207_s8 + $0x20] sm:$0xff] }
  0x9f   : > { %v647_v35 = vpop.permute.xlu1 %646  ;;  %2326 = vmatprep.mubr.msk.f32.mxu0 %vm734_vm0, %v2120_v32  ;;  %v644_v36 = vpop.permute.xlu0 %643  ;;  %2360 = vmatpush3.msra.mxu0 %v580_v23  ;;  %v591_v32 = vld [vmem:[%s3207_s8 + $0x28] sm:$0xff] }
  0xa0   : > { %vm658_vm5 = vcmp.eq.s32.totalorder %v2831_v25, %v644_v36  ;;  %2361 = vmatprep.subr.mxu0 %v579_v34  ;;  %vm659_vm6 = vcmp.eq.s32.totalorder %v2831_v25, %v647_v35  ;;  %v588_v35 = vld [vmem:[%s3207_s8 + $0x10] sm:$0xff]  ;;  %v587_v36 = vld [vmem:[%s3207_s8 + $0x8] sm:$0xff] }
  0xa1   : > { %v2122_v38 = vsel %vm658_vm5, 1.0, %v2680_v28  ;;  %2362 = vmatpush3.msra.mxu0 %v579_v34  ;;  %v2123_v41 = vsel %vm659_vm6, 1.0, %v2680_v28 }
  0xa2   : > { %2327 = vmatmul.mubr.msk.f32.gmra.mxu0 %vm734_vm0, %v2121_v37  ;;  %2363 = vmatprep.subr.mxu0 %v578_v60  ;;  %v586_v37 = vld [vmem:[%s3207_s8] sm:$0xff] }
  0xa3   : > { %v653_v39 = vpop.permute.xlu1 %652  ;;  %2329 = vmatprep.mubr.msk.f32.mxu0 %vm734_vm0, %v2122_v38  ;;  %v650_v40 = vpop.permute.xlu0 %649  ;;  %2364 = vmatpush3.msra.mxu0 %v578_v60  ;;  %v602_v38 = vld [vmem:[%s3209_s10 + $0x38] sm:$0xff] }
  0xa4   : > { %vm660_vm7 = vcmp.eq.s32.totalorder %v2831_v25, %v650_v40  ;;  %vm661_vm8 = vcmp.eq.s32.totalorder %v2831_v25, %v653_v39  ;;  %2365 = vmatprep.subr.mxu0 %v577_v61  ;;  %v601_v39 = vld [vmem:[%s3209_s10 + $0x30] sm:$0xff]  ;;  %v600_v40 = vld [vmem:[%s3209_s10 + $0x28] sm:$0xff] }
  0xa5   : > { %v2124_v42 = vsel %vm660_vm7, 1.0, %v2680_v28  ;;  %v2125_v45 = vsel %vm661_vm8, 1.0, %v2680_v28  ;;  %2366 = vmatpush3.msra.mxu0 %v577_v61 }
  0xa6   : > { %2330 = vmatmul.mubr.msk.f32.gmra.mxu0 %vm734_vm0, %v2123_v41  ;;  %2399 = vmatprep.subr.mxu0 %v584_v63  ;;  %v599_v41 = vld [vmem:[%s3209_s10 + $0x20] sm:$0xff] }
  0xa7   : > { %v691_v43 = vpop.permute.xlu1 %690  ;;  %2332 = vmatprep.mubr.msk.f32.mxu0 %vm734_vm0, %v2124_v42  ;;  %v688_v44 = vpop.permute.xlu0 %687  ;;  %v598_v42 = vld [vmem:[%s3209_s10 + $0x18] sm:$0xff] }
  0xa8   : > { %vm711_vm9 = vcmp.eq.s32.totalorder %v2831_v25, %v691_v43  ;;  %vm710_vm10 = vcmp.eq.s32.totalorder %v2831_v25, %v688_v44 }
  0xa9   : > { %v2127_v46 = vsel %vm711_vm9, 1.0, %v2680_v28  ;;  %v2126_v47 = vsel %vm710_vm10, 1.0, %v2680_v28 }
  0xaa   : > { %2333 = vmatmul.mubr.msk.f32.gmra.mxu0 %vm734_vm0, %v2125_v45  ;;  %2347 = vmatprep.mubr.msk.f32.mxu1 %vm734_vm0, %v2126_v47 }
  0xab   : > { %v697_v48 = vpop.permute.xlu1 %696  ;;  %2348 = vmatmul.mubr.msk.f32.vlgmr.msra.gmra.mxu1 %vm734_vm0, %v2127_v46  ;;  %v694_v49 = vpop.permute.xlu0 %693 }
  0xac   : > { %vm713_vm11 = vcmp.eq.s32.totalorder %v2831_v25, %v697_v48  ;;  %vm712_vm12 = vcmp.eq.s32.totalorder %v2831_v25, %v694_v49  ;;  %2479 = vmatpush3.msra.mxu1 %v580_v23  ;;  %v2955_v23 = vld [vmem:[%s2904_s24 + $0x28] sm:$0xff] }
  0xad   : > { %v2129_v50 = vsel %vm713_vm11, 1.0, %v2680_v28  ;;  %v2128_v51 = vsel %vm712_vm12, 1.0, %v2680_v28  ;;  %2476 = vmatprep.subr.mxu1 %v579_v34 }
  0xae   : > { %2350 = vmatprep.mubr.msk.f32.mxu1 %vm734_vm0, %v2128_v51  ;;  %2480 = vmatpush3.msra.mxu1 %v579_v34  ;;  %v589_v34 = vld [vmem:[%s3207_s8 + $0x18] sm:$0xff] }
  0xaf   : > { %v703_v52 = vpop.permute.xlu1 %702  ;;  %2351 = vmatmul.mubr.msk.f32.gmra.mxu1 %vm734_vm0, %v2129_v50  ;;  %v700_v53 = vpop.permute.xlu0 %699  ;;  %2477 = vmatprep.subr.mxu1 %v578_v60 }
  0xb0   : > { %vm715_vm13 = vcmp.eq.s32.totalorder %v2831_v25, %v703_v52  ;;  %vm714_vm14 = vcmp.eq.s32.totalorder %v2831_v25, %v700_v53  ;;  %2481 = vmatpush3.msra.mxu1 %v578_v60 }
  0xb1   : > { %v2131_v54 = vsel %vm715_vm13, 1.0, %v2680_v28  ;;  %v2130_v55 = vsel %vm714_vm14, 1.0, %v2680_v28  ;;  %2478 = vmatprep.subr.mxu1 %v577_v61 }
  0xb2   : > { %2353 = vmatprep.mubr.msk.f32.mxu1 %vm734_vm0, %v2130_v55  ;;  %2482 = vmatpush3.msra.mxu1 %v577_v61 }
  0xb3   : > { %v709_v56 = vpop.permute.xlu1 %708  ;;  %2354 = vmatmul.mubr.msk.f32.gmra.mxu1 %vm734_vm0, %v2131_v54  ;;  %v706_v57 = vpop.permute.xlu0 %705  ;;  %2379 = vmatprep.subr.mxu1 %v576_v62 }
  0xb4   : > { %vm717_vm15 = vcmp.eq.s32.totalorder %v2831_v25, %v709_v56  ;;  %vm716_vm1 = vcmp.eq.s32.totalorder %v2831_v25, %v706_v57 }
  0xb5   : > { %v2133_v58 = vsel %vm717_vm15, 1.0, %v2680_v28  ;;  %v2132_v59 = vsel %vm716_vm1, 1.0, %v2680_v28 }
  0xb6   : > { %2356 = vmatprep.mubr.msk.f32.mxu1 %vm734_vm0, %v2132_v59  ;;  %v2174_v59 = vld [vmem:[%s3206_s7] ss:$0 sm:$0xff] }
  0xb7   : > { %2357 = vmatmul.mubr.msk.f32.gmra.mxu1 %vm734_vm0, %v2133_v58  ;;  %vm993_vm0 = vcmask 261120  }
 0x15e   : > { %v2325_v0 = vpop.f32.mrf.mxu0 }
 0x160   : > { %v825_v1 = vpop.f32.mrf.mxu0 }
 0x161   : > { %2367 = vmatprep.mubr.msk.f32.mxu0 %vm993_vm0, %v825_v1 }
 0x162   : > { %v2328_v3 = vpop.f32.mrf.mxu0  ;;  %2368 = vmatmul.mubr.msk.f32.vlgmr.msra.gmra.mxu0 %vm993_vm0, %v2325_v0 }
 0x163   : > { %2400 = vmatpush3.msra.mxu0 %v584_v63 }
 0x164   : > { %v835_v5 = vpop.f32.mrf.mxu0  ;;  %2401 = vmatprep.subr.mxu0 %v583_v2 }
 0x165   : > { %2370 = vmatprep.mubr.msk.f32.mxu0 %vm993_vm0, %v835_v5  ;;  %2402 = vmatpush3.msra.mxu0 %v583_v2 }
 0x166   : > { %v2331_v8 = vpop.f32.mrf.mxu0  ;;  %2371 = vmatmul.mubr.msk.f32.gmra.mxu0 %vm993_vm0, %v2328_v3  ;;  %2403 = vmatprep.subr.mxu0 %v582_v4 }
 0x167   : > { %2404 = vmatpush3.msra.mxu0 %v582_v4  ;;  %2407 = vmatprep.mubr.msk.f32.mxu0 %vm993_vm0, %v2911_v6 }
 0x168   : > { %v845_v10 = vpop.f32.mrf.mxu0  ;;  %2405 = vmatprep.subr.mxu0 %v581_v7 }
 0x169   : > { %2373 = vmatprep.mubr.msk.f32.mxu1 %vm993_vm0, %v845_v10  ;;  %2406 = vmatpush3.msra.mxu0 %v581_v7 }
 0x16a   : > { %v2334_v13 = vpop.f32.mrf.mxu0  ;;  %2374 = vmatmul.mubr.msk.f32.vlgmr.msra.gmra.mxu1 %vm993_vm0, %v2331_v8  ;;  %2408 = vmatmul.mubr.msk.f32.vlgmr.msra.gmra.mxu0 %vm993_vm0, %v2921_v9 }
 0x16b   : > { %2380 = vmatpush3.msra.mxu1 %v576_v62  ;;  %v2349_v14 = vpop.f32.mrf.mxu1  ;;  %2410 = vmatprep.mubr.msk.f32.mxu0 %vm993_vm0, %v2924_v11 }
 0x16c   : > { %2381 = vmatprep.subr.mxu1 %v575_v12  ;;  %v855_v16 = vpop.f32.mrf.mxu0  ;;  %2447 = vmatprep.subr.mxu0 %v602_v38 }
 0x16d   : > { %2382 = vmatpush3.msra.mxu1 %v575_v12  ;;  %v954_v17 = vpop.f32.mrf.mxu1  ;;  %2376 = vmatprep.mubr.msk.f32.mxu1 %vm993_vm0, %v855_v16 }
 0x16e   : > { %2383 = vmatprep.subr.mxu1 %v574_v15  ;;  %2377 = vmatmul.mubr.msk.f32.gmra.mxu1 %vm993_vm0, %v2334_v13 }
 0x16f   : > { %2384 = vmatpush3.msra.mxu1 %v574_v15  ;;  %v2352_v21 = vpop.f32.mrf.mxu1  ;;  %2387 = vmatprep.mubr.msk.f32.mxu1 %vm993_vm0, %v954_v17 }
 0x170   : > { %2385 = vmatprep.subr.mxu1 %v573_v18  ;;  %2411 = vmatmul.mubr.msk.f32.gmra.mxu0 %vm993_vm0, %v2943_v19 }
 0x171   : > { %2386 = vmatpush3.msra.mxu1 %v573_v18  ;;  %v964_v22 = vpop.f32.mrf.mxu1  ;;  %2413 = vmatprep.mubr.msk.f32.mxu0 %vm993_vm0, %v2947_v20 }
 0x172   : > { %2388 = vmatmul.mubr.msk.f32.vlgmr.msra.gmra.mxu1 %vm993_vm0, %v2349_v14  ;;  %2419 = vmatprep.subr.mxu1 %v593_v30 }
 0x173   : > { %v2355_v25 = vpop.f32.mrf.mxu1  ;;  %2390 = vmatprep.mubr.msk.f32.mxu1 %vm993_vm0, %v964_v22  ;;  %2420 = vmatpush3.msra.mxu1 %v593_v30 }
 0x174   : > { %2414 = vmatmul.mubr.msk.f32.gmra.mxu0 %vm993_vm0, %v2955_v23  ;;  %2421 = vmatprep.subr.mxu1 %v592_v31 }
 0x175   : > { %v974_v26 = vpop.f32.mrf.mxu1  ;;  %2416 = vmatprep.mubr.msk.f32.mxu0 %vm993_vm0, %v2959_v24  ;;  %2422 = vmatpush3.msra.mxu1 %v592_v31 }
 0x176   : > { %2391 = vmatmul.mubr.msk.f32.gmra.mxu1 %vm993_vm0, %v2352_v21  ;;  %2423 = vmatprep.subr.mxu1 %v591_v32 }
 0x177   : > { %v2358_v28 = vpop.f32.mrf.mxu1  ;;  %2393 = vmatprep.mubr.msk.f32.mxu1 %vm993_vm0, %v974_v26  ;;  %2424 = vmatpush3.msra.mxu1 %v591_v32 }
 0x178   : > { %2417 = vmatmul.mubr.msk.f32.gmra.mxu0 %vm993_vm0, %v2967_v27  ;;  %2425 = vmatprep.subr.mxu1 %v590_v33 }
 0x179   : > { %v984_v29 = vpop.f32.mrf.mxu1  ;;  %2426 = vmatpush3.msra.mxu1 %v590_v33  ;;  %2448 = vmatpush3.msra.mxu0 %v602_v38 }
 0x17a   : > { %2394 = vmatmul.mubr.msk.f32.gmra.mxu1 %vm993_vm0, %v2355_v25  ;;  %2427 = vmatprep.subr.mxu1 %v589_v34 }
 0x17b   : > { %2396 = vmatprep.mubr.msk.f32.mxu1 %vm993_vm0, %v984_v29  ;;  %2428 = vmatpush3.msra.mxu1 %v589_v34 }
 0x17c   : > { %2429 = vmatprep.subr.mxu1 %v588_v35  ;;  %2449 = vmatprep.subr.mxu0 %v601_v39 }
 0x17d   : > { %2430 = vmatpush3.msra.mxu1 %v588_v35  ;;  %2450 = vmatpush3.msra.mxu0 %v601_v39 }
 0x17e   : > { %2397 = vmatmul.mubr.msk.f32.gmra.mxu1 %vm993_vm0, %v2358_v28  ;;  %2431 = vmatprep.subr.mxu1 %v587_v36 }
 0x17f   : > { %2432 = vmatpush3.msra.mxu1 %v587_v36  ;;  %2451 = vmatprep.subr.mxu0 %v600_v40 }
 0x180   : > { %2433 = vmatprep.subr.mxu1 %v586_v37  ;;  %2452 = vmatpush3.msra.mxu0 %v600_v40 }
 0x181   : > { %2434 = vmatpush3.msra.mxu1 %v586_v37  ;;  %2453 = vmatprep.subr.mxu0 %v599_v41 }
 0x182   : > { %2454 = vmatpush3.msra.mxu0 %v599_v41 }
 0x183   : > { %2455 = vmatprep.subr.mxu0 %v598_v42 }
 0x184   : > { %2456 = vmatpush3.msra.mxu0 %v598_v42 }
 0x222   : > { %v2369_v43 = vpop.f32.mrf.mxu0 }
 0x224   : > { %v1084_v44 = vpop.f32.mrf.mxu0 }
 0x226   : > { %v2372_v45 = vpop.f32.mrf.mxu0 }
 0x228   : > { %v1094_v46 = vpop.f32.mrf.mxu0 }
 0x22a   : > { %v2375_v47 = vpop.f32.mrf.mxu1  ;;  %v2409_v48 = vpop.f32.mrf.mxu0 }
 0x22c   : > { %v1104_v49 = vpop.f32.mrf.mxu1  ;;  %v1342_v51 = vpop.f32.mrf.mxu0 }
 0x22e   : > { %v2378_v50 = vpop.f32.mrf.mxu1 }
 0x230   : > { %v1114_v52 = vpop.f32.mrf.mxu1  ;;  %v2412_v53 = vpop.f32.mrf.mxu0 }
 0x232   : > { %v2389_v54 = vpop.f32.mrf.mxu1  ;;  %v1352_v55 = vpop.f32.mrf.mxu0 }
 0x233   : > { %v1219_v56 = vadd.f32 %v2389_v54, %v2369_v43 }
 0x234   : > { %v1213_v57 = vpop.f32.mrf.mxu1  ;;  %v2415_v58 = vpop.f32.mrf.mxu0 }
 0x235   : > { %v1382_v60 = vadd.f32 %v2409_v48, %v1219_v56  ;;  %v1214_v61 = vadd.f32 %v1213_v57, %v1084_v44  ;;  %v597_v44 = vld [vmem:[%s3209_s10 + $0x10] sm:$0xff] }
 0x236   : > { %v2392_v62 = vpop.f32.mrf.mxu1  ;;  %v1362_v3 = vpop.f32.mrf.mxu0  ;;  %2457 = vmatprep.subr.mxu0 %v597_v44 }
 0x237   : > { %v1381_v63 = vadd.f32 %v1342_v51, %v1214_v61  ;;  %v1229_v0 = vadd.f32 %v2392_v62, %v2372_v45  ;;  %v1396_v1 = vadd.f32 %v2174_v59, %v1382_v60  ;;  %2458 = vmatpush3.msra.mxu0 %v597_v44  ;;  %v596_v45 = vld [vmem:[%s3209_s10 + $0x8] sm:$0xff] }
 0x238   : > { %v1223_v2 = vpop.f32.mrf.mxu1  ;;  %v2418_v17 = vpop.f32.mrf.mxu0  ;;  %2459 = vmatprep.subr.mxu0 %v596_v45 }
 0x239   : > { %v1395_v4 = vadd.f32 %v2174_v59, %v1381_v63  ;;  %v1224_v5 = vadd.f32 %v1223_v2, %v1094_v46  ;;  %v1384_v7 = vadd.f32 %v2412_v53, %v1229_v0  ;;  %v1404_v14 = vmax.f32 %v1396_v1, 0.0  ;;  %2460 = vmatpush3.msra.mxu0 %v596_v45  ;;  %v595_v46 = vld [vmem:[%s3209_s10] sm:$0xff] }
 0x23a   : > { %v2395_v8 = vpop.f32.mrf.mxu1  ;;  %v1372_v33 = vpop.f32.mrf.mxu0  ;;  %2461 = vmatprep.subr.mxu0 %v595_v46 }
 0x23b   : > { %v1403_v10 = vmax.f32 %v1395_v4, 0.0  ;;  %v1239_v12 = vadd.f32 %v2395_v8, %v2375_v47  ;;  %v1383_v13 = vadd.f32 %v1352_v55, %v1224_v5  ;;  %v1398_v15 = vadd.f32 %v2174_v59, %v1384_v7  ;;  %2462 = vmatpush3.msra.mxu0 %v595_v46  ;;  %v2175_v47 = vld [vmem:[%s3208_s9] ss:$0 sm:$0xff] }
 0x23c   : > { %v1233_v16 = vpop.f32.mrf.mxu1 }
 0x23d   : > { %v1397_v18 = vadd.f32 %v2174_v59, %v1383_v13  ;;  %v1234_v21 = vadd.f32 %v1233_v16, %v1104_v49  ;;  %v1386_v22 = vadd.f32 %v2415_v58, %v1239_v12  ;;  %2435 = vmatprep.mubr.msk.f32.mxu1 %vm1417_vm2, %v1403_v10  ;;  %v1406_v30 = vmax.f32 %v1398_v15, 0.0  ;;  %v2184_v10 = vld [vmem:[%s3210_s11] ss:$0 sm:$0xff] }
 0x23e   : > { %v2398_v25 = vpop.f32.mrf.mxu1  ;;  %2436 = vmatmul.mubr.msk.f32.vlgmr.msra.gmra.mxu1 %vm1417_vm2, %v1404_v14 }
 0x23f   : > { %v1405_v26 = vmax.f32 %v1397_v18, 0.0  ;;  %v1249_v28 = vadd.f32 %v2398_v25, %v2378_v50  ;;  %v1385_v29 = vadd.f32 %v1362_v3, %v1234_v21  ;;  %v1400_v31 = vadd.f32 %v2174_v59, %v1386_v22 }
 0x240   : > { %v1243_v32 = vpop.f32.mrf.mxu1 }
 0x241   : > { %v1399_v34 = vadd.f32 %v2174_v59, %v1385_v29  ;;  %v1244_v35 = vadd.f32 %v1243_v32, %v1114_v52  ;;  %v1388_v36 = vadd.f32 %v2418_v17, %v1249_v28  ;;  %2438 = vmatprep.mubr.msk.f32.mxu1 %vm1417_vm2, %v1405_v26  ;;  %v1408_v39 = vmax.f32 %v1400_v31, 0.0 }
 0x242   : > { %2439 = vmatmul.mubr.msk.f32.gmra.mxu1 %vm1417_vm2, %v1406_v30 }
 0x243   : > { %v1407_v37 = vmax.f32 %v1399_v34, 0.0  ;;  %v1387_v38 = vadd.f32 %v1372_v33, %v1244_v35  ;;  %v1402_v40 = vadd.f32 %v2174_v59, %v1388_v36 }
 0x245   : > { %v1401_v41 = vadd.f32 %v2174_v59, %v1387_v38  ;;  %2441 = vmatprep.mubr.msk.f32.mxu1 %vm1417_vm2, %v1407_v37  ;;  %v1410_v43 = vmax.f32 %v1402_v40, 0.0 }
 0x246   : > { %2442 = vmatmul.mubr.msk.f32.gmra.mxu1 %vm1417_vm2, %v1408_v39 }
 0x247   : > { %v1409_v42 = vmax.f32 %v1401_v41, 0.0 }
 0x249   : > { %2444 = vmatprep.mubr.msk.f32.mxu1 %vm1417_vm2, %v1409_v42 }
 0x24a   : > { %2445 = vmatmul.mubr.msk.f32.gmra.mxu1 %vm1417_vm2, %v1410_v43 }
 0x2fe   : > { %v2437_v48 = vpop.f32.mrf.mxu1 }
 0x2ff   : > { %v1514_v49 = vadd.f32 %v2437_v48, %v2175_v47 }
 0x300   : > { %v1508_v50 = vpop.f32.mrf.mxu1 }
 0x301   : > { %v1509_v51 = vadd.f32 %v2175_v47, %v1508_v50  ;;  %v1548_v54 = vmax.f32 %v1514_v49, 0.0 }
 0x302   : > { %v2440_v52 = vpop.f32.mrf.mxu1 }
 0x303   : > { %v1547_v53 = vmax.f32 %v1509_v51, 0.0  ;;  %v1524_v55 = vadd.f32 %v2440_v52, %v2175_v47 }
 0x304   : > { %v1518_v56 = vpop.f32.mrf.mxu1 }
 0x305   : > { %v1519_v57 = vadd.f32 %v2175_v47, %v1518_v56  ;;  %2463 = vmatprep.mubr.msk.f32.mxu0 %vm1417_vm2, %v1547_v53  ;;  %v1550_v60 = vmax.f32 %v1524_v55, 0.0 }
 0x306   : > { %v2443_v58 = vpop.f32.mrf.mxu1  ;;  %2464 = vmatmul.mubr.msk.f32.vlgmr.msra.gmra.mxu0 %vm1417_vm2, %v1548_v54 }
 0x307   : > { %v1549_v59 = vmax.f32 %v1519_v57, 0.0  ;;  %v1534_v61 = vadd.f32 %v2443_v58, %v2175_v47 }
 0x308   : > { %v1528_v62 = vpop.f32.mrf.mxu1 }
 0x309   : > { %v1529_v63 = vadd.f32 %v2175_v47, %v1528_v62  ;;  %2466 = vmatprep.mubr.msk.f32.mxu0 %vm1417_vm2, %v1549_v59  ;;  %v1552_v2 = vmax.f32 %v1534_v61, 0.0 }
 0x30a   : > { %v2446_v0 = vpop.f32.mrf.mxu1  ;;  %2467 = vmatmul.mubr.msk.f32.gmra.mxu0 %vm1417_vm2, %v1550_v60 }
 0x30b   : > { %v1551_v1 = vmax.f32 %v1529_v63, 0.0  ;;  %v1544_v3 = vadd.f32 %v2446_v0, %v2175_v47 }
 0x30c   : > { %v1538_v4 = vpop.f32.mrf.mxu1 }
 0x30d   : > { %v1539_v5 = vadd.f32 %v2175_v47, %v1538_v4  ;;  %2469 = vmatprep.mubr.msk.f32.mxu0 %vm1417_vm2, %v1551_v1  ;;  %v1554_v8 = vmax.f32 %v1544_v3, 0.0 }
 0x30e   : > { %2470 = vmatmul.mubr.msk.f32.gmra.mxu0 %vm1417_vm2, %v1552_v2 }
 0x30f   : > { %v1553_v7 = vmax.f32 %v1539_v5, 0.0 }
 0x311   : > { %2472 = vmatprep.mubr.msk.f32.mxu0 %vm1417_vm2, %v1553_v7 }
 0x312   : > { %2473 = vmatmul.mubr.msk.f32.gmra.mxu0 %vm1417_vm2, %v1554_v8 }
 0x3c6   : > { %v2465_v12 = vpop.f32.mrf.mxu0 }
 0x3c7   : > { %v1657_v13 = vadd.f32 %v2465_v12, %v2184_v10 }
 0x3c8   : > { %v1651_v14 = vpop.f32.mrf.mxu0 }
 0x3c9   : > { %v1652_v15 = vadd.f32 %v2184_v10, %v1651_v14  ;;  %v1693_v16 = vsel %vm993_vm0, %v1657_v13, 0.0 }
 0x3ca   : > { %1694 = vadd.xlane.f32.xlu1 %v1693_v16  ;;  %v2468_v17 = vpop.f32.mrf.mxu0 }
 0x3cb   : > { %v1667_v18 = vadd.f32 %v2468_v17, %v2184_v10  ;;  %v1690_v21 = vsel %vm993_vm0, %v1652_v15, 0.0 }
 0x3cc   : > { %v1661_v22 = vpop.f32.mrf.mxu0  ;;  %1691 = vadd.xlane.f32.xlu0 %v1690_v21 }
 0x3cd   : > { %v1662_v26 = vadd.f32 %v2184_v10, %v1661_v22  ;;  %v1699_v28 = vsel %vm993_vm0, %v1667_v18, 0.0 }
 0x3ce   : > { %v2471_v25 = vpop.f32.mrf.mxu0 }
 0x3cf   : > { %v1677_v32 = vadd.f32 %v2471_v25, %v2184_v10  ;;  %v1696_v34 = vsel %vm993_vm0, %v1662_v26, 0.0 }
 0x3d0   : > { %v1671_v29 = vpop.f32.mrf.mxu0  ;;  %1700 = vadd.xlane.f32.xlu0 %v1699_v28 }
 0x3d1   : > { %v1672_v30 = vadd.f32 %v2184_v10, %v1671_v29  ;;  %v1705_v39 = vsel %vm993_vm0, %v1677_v32, 0.0 }
 0x3d2   : > { %v2474_v31 = vpop.f32.mrf.mxu0 }
 0x3d3   : > { %v1702_v33 = vsel %vm993_vm0, %v1672_v30, 0.0  ;;  %v1687_v37 = vadd.f32 %v2474_v31, %v2184_v10 }
 0x3d4   : > { %v1681_v35 = vpop.f32.mrf.mxu0  ;;  %1703 = vadd.xlane.f32.xlu1 %v1702_v33  ;;  %1697 = vadd.xlane.f32.xlu0 %v1696_v34 }
 0x3d5   : > { %v1682_v36 = vadd.f32 %v2184_v10, %v1681_v35  ;;  %v1711_v40 = vsel %vm993_vm0, %v1687_v37, 0.0 }
 0x3d7   : > { %v1708_v38 = vsel %vm993_vm0, %v1682_v36, 0.0 }
 0x3d8   : > { %1709 = vadd.xlane.f32.xlu1 %v1708_v38  ;;  %1706 = vadd.xlane.f32.xlu0 %v1705_v39 }
 0x3dc   : > { %1712 = vadd.xlane.f32.xlu0 %v1711_v40 }
 0x453   : > { %v1695_v41 = vpop.xlane.xlu1 %1694 }
 0x454   : > { %v1716_v42 = vmul.f32 0.03125, %v1695_v41 }
 0x455   : > { %v1692_v43 = vpop.xlane.xlu0 %1691 }
 0x456   : > { %v3057_v44 = vsub.f32 %v1657_v13, %v1716_v42  ;;  %v1715_v45 = vmul.f32 0.03125, %v1692_v43 }
 0x458   : > { %v3059_v46 = vsub.f32 %v1652_v15, %v1715_v45  ;;  %v1732_v47 = vmul.f32 %v3057_v44, %v3057_v44  ;;  %v2193_v45 = vld [vmem:[%s3211_s12] ss:$0 sm:$0xff] }
 0x459   : > { %v1701_v48 = vpop.xlane.xlu0 %1700 }
 0x45a   : > { %v1718_v49 = vmul.f32 0.03125, %v1701_v48  ;;  %v1742_v50 = vsel %vm993_vm0, %v1732_v47, 0.0  ;;  %v1731_v51 = vmul.f32 %v3059_v46, %v3059_v46 }
 0x45b   : > { %1743 = vadd.xlane.f32.xlu0 %v1742_v50 }
 0x45c   : > { %v3066_v52 = vsub.f32 %v1667_v18, %v1718_v49  ;;  %v1739_v53 = vsel %vm993_vm0, %v1731_v51, 0.0 }
 0x45d   : > { %v1704_v54 = vpop.xlane.xlu1 %1703  ;;  %1740 = vadd.xlane.f32.xlu1 %v1739_v53  ;;  %v1698_v55 = vpop.xlane.xlu0 %1697 }
 0x45e   : > { %v1719_v56 = vmul.f32 0.03125, %v1704_v54  ;;  %v1717_v57 = vmul.f32 0.03125, %v1698_v55  ;;  %v1734_v58 = vmul.f32 %v3066_v52, %v3066_v52  ;;  %v2194_v54 = vld [vmem:[%s3212_s13] ss:$0 sm:$0xff] }
 0x460   : > { %v3071_v59 = vsub.f32 %v1672_v30, %v1719_v56  ;;  %v3073_v60 = vsub.f32 %v1662_v26, %v1717_v57  ;;  %v1748_v61 = vsel %vm993_vm0, %v1734_v58, 0.0 }
 0x461   : > { %v1710_v62 = vpop.xlane.xlu1 %1709  ;;  %1749 = vadd.xlane.f32.xlu0 %v1748_v61  ;;  %v1707_v63 = vpop.xlane.xlu0 %1706 }
 0x462   : > { %v1721_v0 = vmul.f32 0.03125, %v1710_v62  ;;  %v1720_v1 = vmul.f32 0.03125, %v1707_v63  ;;  %v1733_v2 = vmul.f32 %v3073_v60, %v3073_v60  ;;  %v1735_v7 = vmul.f32 %v3071_v59, %v3071_v59 }
 0x464   : > { %v3078_v3 = vsub.f32 %v1682_v36, %v1721_v0  ;;  %v3080_v4 = vsub.f32 %v1677_v32, %v1720_v1  ;;  %v1745_v5 = vsel %vm993_vm0, %v1733_v2, 0.0  ;;  %v1751_v14 = vsel %vm993_vm0, %v1735_v7, 0.0 }
 0x465   : > { %1746 = vadd.xlane.f32.xlu1 %v1745_v5  ;;  %v1713_v8 = vpop.xlane.xlu0 %1712 }
 0x466   : > { %v1722_v10 = vmul.f32 0.03125, %v1713_v8  ;;  %v1736_v12 = vmul.f32 %v3080_v4, %v3080_v4  ;;  %v1737_v16 = vmul.f32 %v3078_v3, %v3078_v3 }
 0x468   : > { %v3087_v13 = vsub.f32 %v1687_v37, %v1722_v10  ;;  %v1754_v15 = vsel %vm993_vm0, %v1736_v12, 0.0  ;;  %v1757_v18 = vsel %vm993_vm0, %v1737_v16, 0.0 }
 0x469   : > { %1752 = vadd.xlane.f32.xlu1 %v1751_v14  ;;  %1755 = vadd.xlane.f32.xlu0 %v1754_v15 }
 0x46a   : > { %v1738_v17 = vmul.f32 %v3087_v13, %v3087_v13 }
 0x46c   : > { %v1760_v21 = vsel %vm993_vm0, %v1738_v17, 0.0 }
 0x46d   : > { %1758 = vadd.xlane.f32.xlu1 %v1757_v18  ;;  %1761 = vadd.xlane.f32.xlu0 %v1760_v21 }
 0x4e4   : > { %v1744_v22 = vpop.xlane.xlu0 %1743 }
 0x4e5   : > { %v1764_v25 = vmul.f32 0.03125, %v1744_v22 }
 0x4e6   : > { %v1741_v26 = vpop.xlane.xlu1 %1740 }
 0x4e7   : > { %v1772_v28 = vadd.f32 1e-05, %v1764_v25  ;;  %v1763_v29 = vmul.f32 0.03125, %v1741_v26 }
 0x4e9   : > { %2575 = vrsqrt.f32 %v1772_v28  ;;  %v1771_v30 = vadd.f32 1e-05, %v1763_v29 }
 0x4ea   : > { %v1750_v31 = vpop.xlane.xlu0 %1749 }
 0x4eb   : > { %2577 = vrsqrt.f32 %v1771_v30  ;;  %v1766_v32 = vmul.f32 0.03125, %v1750_v31 }
 0x4ed   : > { %v1774_v33 = vadd.f32 1e-05, %v1766_v32 }
 0x4ee   : > { %v1747_v34 = vpop.xlane.xlu1 %1746 }
 0x4ef   : > { %2579 = vrsqrt.f32 %v1774_v33  ;;  %v1765_v35 = vmul.f32 0.03125, %v1747_v34 }
 0x4f1   : > { %v1773_v36 = vadd.f32 1e-05, %v1765_v35 }
 0x4f2   : > { %v1753_v37 = vpop.xlane.xlu1 %1752  ;;  %v1756_v38 = vpop.xlane.xlu0 %1755 }
 0x4f3   : > { %2581 = vrsqrt.f32 %v1773_v36  ;;  %v1767_v39 = vmul.f32 0.03125, %v1753_v37  ;;  %v1768_v40 = vmul.f32 0.03125, %v1756_v38 }
 0x4f5   : > { %v1775_v41 = vadd.f32 1e-05, %v1767_v39  ;;  %v1776_v42 = vadd.f32 1e-05, %v1768_v40 }
 0x4f6   : > { %v2576_v43 = vpop.eup %2575  ;;  %v1759_v47 = vpop.xlane.xlu1 %1758 }
 0x4f7   : > { %v1762_v48 = vpop.xlane.xlu0 %1761  ;;  %v1788_v49 = vmul.f32 %v2576_v43, %v3057_v44  ;;  %2583 = vrsqrt.f32 %v1775_v41  ;;  %v1769_v50 = vmul.f32 0.03125, %v1759_v47 }
 0x4f8   : > { %v1770_v51 = vmul.f32 0.03125, %v1762_v48  ;;  %v2578_v53 = vpop.eup %2577  ;;  %2585 = vrsqrt.f32 %v1776_v42 }
 0x4f9   : > { %v1802_v55 = vmul.f32 %v2193_v45, %v1788_v49  ;;  %v1787_v56 = vmul.f32 %v2578_v53, %v3059_v46  ;;  %v1777_v57 = vadd.f32 1e-05, %v1769_v50 }
 0x4fa   : > { %v1778_v58 = vadd.f32 1e-05, %v1770_v51 }
 0x4fb   : > { %v1816_v61 = vadd.f32 %v2194_v54, %v1802_v55  ;;  %v1801_v62 = vmul.f32 %v2193_v45, %v1787_v56  ;;  %2587 = vrsqrt.f32 %v1777_v57 }
 0x4fc   : > { %v2580_v63 = vpop.eup %2579  ;;  %2589 = vrsqrt.f32 %v1778_v58 }
 0x4fd   : > { %v1824_v44 = vadd.f32 %v1816_v61, %v2921_v9  ;;  %v1815_v0 = vadd.f32 %v2194_v54, %v1801_v62  ;;  %v1790_v1 = vmul.f32 %v2580_v63, %v3066_v52 }
 0x4ff   : > { %1832 = vst.msk [vmem:[%s3108_s29 + $0x8] sm:$0xff] %vm993_vm0, %v1824_v44  ;;  %v1823_v46 = vadd.f32 %v1815_v0, %v2911_v6  ;;  %v1804_v2 = vmul.f32 %v2193_v45, %v1790_v1 }
 0x500   : > { %v2582_v5 = vpop.eup %2581 }
 0x501   : > { %1831 = vst.msk [vmem:[%s3108_s29] sm:$0xff] %vm993_vm0, %v1823_v46  ;;  %v1818_v7 = vadd.f32 %v2194_v54, %v1804_v2  ;;  %v1789_v9 = vmul.f32 %v2582_v5, %v3073_v60 }
 0x503   : > { %v1826_v8 = vadd.f32 %v1818_v7, %v2943_v19  ;;  %v1803_v52 = vmul.f32 %v2193_v45, %v1789_v9 }
 0x504   : > { %v2584_v10 = vpop.eup %2583 }
 0x505   : > { %v2586_v12 = vpop.eup %2585  ;;  %1834 = vst.msk [vmem:[%s3108_s29 + $0x18] sm:$0xff] %vm993_vm0, %v1826_v8  ;;  %v1817_v14 = vadd.f32 %v2194_v54, %v1803_v52  ;;  %v1791_v15 = vmul.f32 %v2584_v10, %v3071_v59 }
 0x506   : > { %v1792_v6 = vmul.f32 %v2586_v12, %v3080_v4 }
 0x507   : > { %v1825_v16 = vadd.f32 %v1817_v14, %v2924_v11  ;;  %v1805_v17 = vmul.f32 %v2193_v45, %v1791_v15 }
 0x508   : > { %v2588_v18 = vpop.eup %2587  ;;  %v1806_v21 = vmul.f32 %v2193_v45, %v1792_v6 }
 0x509   : > { %v2590_v60 = vpop.eup %2589  ;;  %1833 = vst.msk [vmem:[%s3108_s29 + $0x10] sm:$0xff] %vm993_vm0, %v1825_v16  ;;  %v1819_v19 = vadd.f32 %v2194_v54, %v1805_v17  ;;  %v1793_v22 = vmul.f32 %v2588_v18, %v3078_v3 }
 0x50a   : > { %v1820_v25 = vadd.f32 %v2194_v54, %v1806_v21  ;;  %v1794_v59 = vmul.f32 %v2590_v60, %v3087_v13 }
 0x50b   : > { %v1827_v26 = vadd.f32 %v1819_v19, %v2947_v20  ;;  %v1807_v4 = vmul.f32 %v2193_v45, %v1793_v22 }
 0x50c   : > { %v1828_v11 = vadd.f32 %v1820_v25, %v2955_v23  ;;  %v1808_v28 = vmul.f32 %v2193_v45, %v1794_v59 }
 0x50d   : > { %1835 = vst.msk [vmem:[%s3108_s29 + $0x20] sm:$0xff] %vm993_vm0, %v1827_v26  ;;  %v1821_v29 = vadd.f32 %v2194_v54, %v1807_v4 }
 0x50e   : > { %1836 = vst.msk [vmem:[%s3108_s29 + $0x28] sm:$0xff] %vm993_vm0, %v1828_v11  ;;  %v1822_v30 = vadd.f32 %v2194_v54, %v1808_v28  ;;  %1845 = sbr.rel (!%p2781_p4) target bundleno = 1338 (0x53a), region = 80 }
 0x50f   : > { %v1829_v31 = vadd.f32 %v1821_v29, %v2959_v24 }
 0x510   : > { %v1830_v32 = vadd.f32 %v1822_v30, %v2967_v27 }
 0x511   : > { %1837 = vst.msk [vmem:[%s3108_s29 + $0x30] sm:$0xff] %vm993_vm0, %v1829_v31 }
 0x512   : > { %1838 = vst.msk [vmem:[%s3108_s29 + $0x38] sm:$0xff] %vm993_vm0, %v1830_v32 }
 0x513   : > { %s3228_s28 = smov (!%p1848_p8, %s1847_s28), 8 }
 0x514   : > { %s2197_s23 = sshll.u32 %s3228_s28, 7 }
 0x515   : > { %p2200_p9 = scmp.eq.s32.totalorder %s2197_s23, 0 }
 0x516   : > { %s3151_s25 = sshrl.u32 (!%p2200_p9), %s3228_s28, 3 }
 0x517   : > { %1856 = sbr.rel (%p2200_p9) target bundleno = 1338 (0x53a), region = 84  ;;  %p2201_p10 = scmp.le.s32.totalorder (!%p2200_p9), %s3151_s25, 0 }
 0x51c   : > { %2051 = sbr.rel (%p2201_p10) target bundleno = 1321 (0x529), region = 166  ;;  %s3221_s16 = smov (!%p2201_p10), %s3145_s19 }
 0x51d   : > { %s3222_s21 = smov (!%p2201_p10), %s3108_s29  ;;  %s3160_s22 = smov (!%p2201_p10), 0  }
 0x51e   : > { %s3162_s26 = smov (!%p2201_p10), 0  }
 0x521 LB: >> { %v1933_v20 = vld [vmem:[%s2653_s21] sm:$0xff]  ;;  %v1935_v23 = vld [vmem:[%s2653_s21 + $0x8] sm:$0xff]  ;;  %v1937_v24 = vld [vmem:[%s2653_s21 + $0x10] sm:$0xff]  ;;  %s1949_s27 = sadd.s32 1, %s2657_s22  ;;  %s1927_s26 = sadd.s32 1, %s2661_s26   ;;  %s2661_s26 = sphi %s3162_s26, %s1927_s26   ;;  %s2657_s22 = sphi %s3160_s22, %s3223_s22   ;;  %s2653_s21 = sphi %s3222_s21, %s1954_s21   ;;  %s2649_s16 = sphi %s3221_s16, %s1955_s16  }
 0x522   : >> { %1934 = vst [vmem:[%s2649_s16] sm:$0xff] %v1933_v20  ;;  %1936 = vst [vmem:[%s2649_s16 + $0x8] sm:$0xff] %v1935_v23  ;;  %v1939_v27 = vld [vmem:[%s2653_s21 + $0x18] sm:$0xff]  ;;  %v1941_v3 = vld [vmem:[%s2653_s21 + $0x20] sm:$0xff]  ;;  %p1950_p11 = scmp.ge.s32.totalorder %s1949_s27, %s3151_s25  ;;  %p1926_p12 = scmp.ge.s32.totalorder %s1927_s26, %s3151_s25 }
 0x523   : >> { %1938 = vst [vmem:[%s2649_s16 + $0x10] sm:$0xff] %v1937_v24  ;;  %v1943_v13 = vld [vmem:[%s2653_s21 + $0x28] sm:$0xff]  ;;  %1940 = vst [vmem:[%s2649_s16 + $0x18] sm:$0xff] %v1939_v27  ;;  %v1945_v33 = vld [vmem:[%s2653_s21 + $0x30] sm:$0xff] }
 0x524   : >> { %1942 = vst [vmem:[%s2649_s16 + $0x20] sm:$0xff] %v1941_v3  ;;  %1944 = vst [vmem:[%s2649_s16 + $0x28] sm:$0xff] %v1943_v13  ;;  %v1947_v34 = vld [vmem:[%s2653_s21 + $0x38] sm:$0xff]  ;;  %s3230_s27 = smov (%p1950_p11, %s1949_s27), 0  ;;  %1929 = sbr.rel (!%p1926_p12) target bundleno = 1313 (0x521), region = 172 }
 0x525   : >> { %1946 = vst [vmem:[%s2649_s16 + $0x30] sm:$0xff] %v1945_v33  ;;  %1948 = vst [vmem:[%s2649_s16 + $0x38] sm:$0xff] %v1947_v34  ;;  %s2202_s18 = sshll.u32 %s3230_s27, 6  ;;  %s3223_s22 = smov %s3230_s27 }
 0x526   : >> { %s1954_s21 = scalar_lea.vmem %s3108_s29, %s2202_s18 [#allocation2]   ;;  %s1955_s16 = scalar_lea.vmem %s3145_s19, %s2202_s18  }
 0x529 PF: > { %s3181_s15 = sand.u32 7, %s3228_s28   ;;  %s2213_s24 = sshll.u32 %s3151_s25, 6 }
 0x52a   : > { %s1960_s23 = scalar_lea.vmem %s3108_s29, %s2213_s24 [#allocation2]   ;;  %s1962_s18 = scalar_lea.vmem %s3145_s19, %s2213_s24  }
 0x52b   : > { %p2207_p13 = scmp.le.s32.totalorder %s3181_s15, 0 }
 0x52c   : > { %s2663_s0 = smov (!%p2207_p13), %s1962_s18   ;;  %s2667_s1 = smov (!%p2207_p13), %s1960_s23  }
 0x52d   : > { %2065 = sbr.rel (%p2207_p13) target bundleno = 1338 (0x53a), region = 177  ;;  %s2671_s2 = smov (!%p2207_p13), 0  }
 0x52e   : > { %s2675_s27 = smov (!%p2207_p13), 0  }
 0x532 LB: >> { %v1972_v35 = vld [vmem:[%s2669_s1] sm:$0xff]  ;;  %s1974_s28 = sadd.s32 1, %s2673_s2  ;;  %s1966_s27 = sadd.s32 1, %s2677_s27   ;;  %s2677_s27 = sphi %s2675_s27, %s1966_s27   ;;  %s2673_s2 = sphi %s2671_s2, %s2672_s2   ;;  %s2669_s1 = sphi %s2667_s1, %s1979_s1   ;;  %s2665_s0 = sphi %s2663_s0, %s1980_s0  }
 0x533   : >> { %1973 = vst [vmem:[%s2665_s0] sm:$0xff] %v1972_v35  ;;  %p1975_p0 = scmp.ge.s32.totalorder %s1974_s28, %s3181_s15  ;;  %p1965_p1 = scmp.ge.s32.totalorder %s1966_s27, %s3181_s15 }
 0x535   : >> { %s3232_s28 = smov (%p1975_p0, %s1974_s28), 0  ;;  %1968 = sbr.rel (!%p1965_p1) target bundleno = 1330 (0x532), region = 183 }
 0x536   : >> { %s2208_s29 = sshll.u32 %s3232_s28, 3  ;;  %s2672_s2 = smov %s3232_s28  }
 0x537   : >> { %s1979_s1 = scalar_lea.vmem %s1960_s23, %s2208_s29 [#allocation2]   ;;  %s1980_s0 = scalar_lea.vmem %s1962_s18, %s2208_s29  }
 0x53a PF: > { %p21_p2 = scmp.ge.s32.totalorder %s2771_s17, 6   ;;  %s3224_s29 = smov %s2641_s30 }
 0x53b   : > { %s3225_s30 = smov %s2779_s20  ;;  %s3226_s15 = smov %s2771_s17 }
 0x53c   :  { %23 = sbr.rel (!%p21_p2) target bundleno = 6 (0x6), region = 194 }

</bundles_post_ra>
